<compile_context>
chip_gen: v7x
topology: tpu7x:2x2x1
jax: 0.10.0
libtpu: 0.0.40
codegen_flags: <defaults>
</compile_context>

<pallas_src>
import jax
import jax.numpy as jnp
from jax.experimental import pallas as pl
from jax.experimental.pallas import tpu as pltpu

LANE = 128                  # TPU vreg lane width
DEFAULT_BATCH_TILE = 16384  # lanes (batch rows) per grid step


def _round_up(n, m):
    return ((n + m - 1) // m) * m


def mlp_kernel(x_ref, w1t_ref, b1t_ref, w2t_ref, b2t_ref, ot_ref):
    # x arrives untransposed as [TB, in]; flip it on the XLU so the batch rides
    # the 128-lane axis.  Every matmul operand and the output store below is
    # then lane-dense (plain vst, no masked stores).
    xt = jnp.transpose(x_ref[...])                              # [in, TB]
    h = jnp.dot(w1t_ref[...], xt,
                preferred_element_type=jnp.float32)             # [hid, TB]  MXU, f32 acc
    h = jnp.maximum(h + b1t_ref[...], 0.0)                      # bias + ReLU, VPU, f32
    y = jnp.dot(w2t_ref[...].astype(jnp.float32), h,
                preferred_element_type=jnp.float32)             # [out, TB]  MXU, f32
    ot_ref[...] = (y + b2t_ref[...]).astype(ot_ref.dtype)       # lane-dense store


def _choose_batch_tile(B, batch_tile):
    # Small problems: one full-extent block (block dims == array dims satisfy
    # the (8,128)/(16,128) divisibility rule regardless of B).
    if B <= 2 * LANE:
        return B
    # Otherwise lane-aligned tiles, capped so there are >= 2 tiles -> both v7x
    # TensorCores get work through the "parallel" batch axis.
    half = _round_up(-(-B // 2), LANE)
    return max(LANE, min(batch_tile, half))


def simple_mlp(x, w1, b1, w2, b2, *, batch_tile=DEFAULT_BATCH_TILE):
    """relu(x @ w1 + b1) @ w2 + b2, batch-on-lanes inside the kernel.

    x: [B, in]   w1: [in, hid]   b1: [1, hid]   w2: [hid, out]   b2: [1, out]
    """
    B, in_dim = x.shape
    hid = w1.shape[1]
    out_dim = w2.shape[1]

    tb = _choose_batch_tile(B, batch_tile)
    n_tiles = pl.cdiv(B, tb)

    # Tiny-parameter layout plumbing only (a few hundred bytes of HBM work).
    # x itself goes in untransposed and unpadded: no extra HBM pass.
    w1t = jnp.transpose(w1)                                     # [hid, in]
    w2t = jnp.transpose(w2)                                     # [out, hid]
    b1t = jnp.reshape(b1, (hid, 1)).astype(jnp.float32)         # lane-broadcast, f32 VPU
    b2t = jnp.reshape(b2, (out_dim, 1)).astype(jnp.float32)

    vmem = pltpu.MemorySpace.VMEM
    yt = pl.pallas_call(
        mlp_kernel,
        out_shape=jax.ShapeDtypeStruct((out_dim, B), x.dtype),
        grid=(n_tiles,),
        in_specs=[
            # activations: tiled along batch (sublane axis here; in_dim full-extent)
            pl.BlockSpec((tb, in_dim), lambda i: (i, 0), memory_space=vmem),
            # weights / biases: full-extent, constant block index -> VMEM-resident
            pl.BlockSpec((hid, in_dim), lambda i: (0, 0), memory_space=vmem),
            pl.BlockSpec((hid, 1), lambda i: (0, 0), memory_space=vmem),
            pl.BlockSpec((out_dim, hid), lambda i: (0, 0), memory_space=vmem),
            pl.BlockSpec((out_dim, 1), lambda i: (0, 0), memory_space=vmem),
        ],
        out_specs=pl.BlockSpec((out_dim, tb), lambda i: (0, i), memory_space=vmem),
        compiler_params=pltpu.CompilerParams(
            dimension_semantics=("parallel",),          # shard batch tiles across TCs on v7x
            vmem_limit_bytes=48 * 1024 * 1024,          # headroom; actual use ~20 MiB at TB=16K
        ),
    )(x, w1t, b1t, w2t, b2t)

    # Output is tiny (8 B/row); transposing it back is far cheaper than the
    # masked [TB,2] stores a row-major kernel output would need.
    return jnp.transpose(yt)                                    # [B, out]


def init_params(key, dtype=jnp.float32):
    # Deterministic init mirroring nn.Linear's U(-1/sqrt(fan_in), 1/sqrt(fan_in)).
    k1, k2, k3, k4 = jax.random.split(key, 4)
    in1, out1 = 10, 20
    in2, out2 = 20, 2
    lim1 = 1.0 / jnp.sqrt(jnp.float32(in1))
    lim2 = 1.0 / jnp.sqrt(jnp.float32(in2))
    w1 = jax.random.uniform(k1, (in1, out1), jnp.float32, -lim1, lim1).astype(dtype)
    b1 = jax.random.uniform(k2, (1, out1), jnp.float32, -lim1, lim1)   # biases stay f32
    w2 = jax.random.uniform(k3, (in2, out2), jnp.float32, -lim2, lim2).astype(dtype)
    b2 = jax.random.uniform(k4, (1, out2), jnp.float32, -lim2, lim2)
    return w1, b1, w2, b2


def mlp_ref(x, w1, b1, w2, b2):
    hp = jax.lax.Precision.HIGHEST
    h = jnp.maximum(jnp.dot(x, w1, precision=hp) + b1, 0.0)
    return jnp.dot(h, w2, precision=hp) + b2


if __name__ == "__main__":
    key = jax.random.PRNGKey(0)
    kx, kp, kx2 = jax.random.split(key, 3)

    # --- small-batch f32 check (shapes implied by the PyTorch module) ---
    B = 8
    x = jax.random.normal(kx, (B, 10), jnp.float32)
    w1, b1, w2, b2 = init_params(kp)
    out = jax.block_until_ready(simple_mlp(x, w1, b1, w2, b2))
    ref = mlp_ref(x, w1, b1, w2, b2)
    assert out.shape == (B, 2)
    # Tolerance covers TPU f32 matmuls running as bf16 MXU passes at DEFAULT precision.
    assert jnp.allclose(out, ref, atol=1e-2, rtol=1e-2)

    # --- larger batch exercises the tiled grid (tb=512, 2 tiles, ragged edge) ---
    B2 = 1000
    x2 = jax.random.normal(kx2, (B2, 10), jnp.float32)
    out2 = jax.block_until_ready(simple_mlp(x2, w1, b1, w2, b2))
    ref2 = mlp_ref(x2, w1, b1, w2, b2)
    assert out2.shape == (B2, 2)
    assert jnp.allclose(out2, ref2, atol=1e-2, rtol=1e-2)

    # --- bf16 weights + activations (halves HBM bytes on v6e/v7x), f32 accumulate ---
    out_bf16 = jax.block_until_ready(
        simple_mlp(x2.astype(jnp.bfloat16),
                   w1.astype(jnp.bfloat16), b1,
                   w2.astype(jnp.bfloat16), b2))
    assert out_bf16.shape == (B2, 2)
    assert jnp.allclose(out_bf16.astype(jnp.float32), ref2, atol=5e-2, rtol=5e-2)

    print("KERNEL_OK")
</pallas_src>

<mosaic_0001>
module attributes {stable_mosaic.version = 11 : i64} {
  func.func @mlp_kernel(%arg0: i32, %arg1: memref<8x10xf32, #tpu.memory_space<vmem>>, %arg2: memref<20x10xf32, #tpu.memory_space<vmem>>, %arg3: memref<20x1xf32, #tpu.memory_space<vmem>>, %arg4: memref<2x20xf32, #tpu.memory_space<vmem>>, %arg5: memref<2x1xf32, #tpu.memory_space<vmem>>, %arg6: memref<2x8xf32, #tpu.memory_space<vmem>>) attributes {dimension_semantics = [#tpu.dimension_semantics<parallel>], iteration_bounds = array<i64: 1>, scalar_prefetch = 0 : i64, scratch_operands = 0 : i64, tpu.core_type = #tpu.core_type<tc>, window_params = [{transform_indices = @transform_0, window_bounds = array<i64: 8, 10>}, {pipeline_mode = #tpu.pipeline_mode<synchronous>, transform_indices = @transform_1, window_bounds = array<i64: 20, 10>}, {pipeline_mode = #tpu.pipeline_mode<synchronous>, transform_indices = @transform_2, window_bounds = array<i64: 20, 1>}, {pipeline_mode = #tpu.pipeline_mode<synchronous>, transform_indices = @transform_3, window_bounds = array<i64: 2, 20>}, {pipeline_mode = #tpu.pipeline_mode<synchronous>, transform_indices = @transform_4, window_bounds = array<i64: 2, 1>}, {transform_indices = @transform_5, window_bounds = array<i64: 2, 8>}]} {
    %c0 = arith.constant 0 : index
    %c0_0 = arith.constant 0 : index
    %0 = vector.load %arg1[%c0, %c0_0] : memref<8x10xf32, #tpu.memory_space<vmem>>, vector<8x10xf32>
    %1 = tpu.transpose %0, [1, 0] : vector<8x10xf32> -> vector<10x8xf32>
    %c0_1 = arith.constant 0 : index
    %c0_2 = arith.constant 0 : index
    %2 = vector.load %arg2[%c0_1, %c0_2] : memref<20x10xf32, #tpu.memory_space<vmem>>, vector<20x10xf32>
    %cst = arith.constant dense<0.000000e+00> : vector<20x8xf32>
    %3 = tpu.matmul %2, %1, %cst {dimension_numbers = #tpu.dot_dimension_numbers<[1], [0], [0], [1], [0, 0, 1, 1], [], []>} : vector<20x10xf32>, vector<10x8xf32>, vector<20x8xf32> -> vector<20x8xf32>
    %c0_3 = arith.constant 0 : index
    %c0_4 = arith.constant 0 : index
    %4 = vector.load %arg3[%c0_3, %c0_4] : memref<20x1xf32, #tpu.memory_space<vmem>>, vector<20x1xf32>
    %5 = vector.broadcast %4 : vector<20x1xf32> to vector<20x8xf32>
    %6 = arith.addf %3, %5 : vector<20x8xf32>
    %cst_5 = arith.constant 0.000000e+00 : f32
    %7 = vector.broadcast %cst_5 : f32 to vector<20x8xf32>
    %8 = arith.maximumf %6, %7 : vector<20x8xf32>
    %c0_6 = arith.constant 0 : index
    %c0_7 = arith.constant 0 : index
    %9 = vector.load %arg4[%c0_6, %c0_7] : memref<2x20xf32, #tpu.memory_space<vmem>>, vector<2x20xf32>
    %cst_8 = arith.constant dense<0.000000e+00> : vector<2x8xf32>
    %10 = tpu.matmul %9, %8, %cst_8 {dimension_numbers = #tpu.dot_dimension_numbers<[1], [0], [0], [1], [0, 0, 1, 1], [], []>} : vector<2x20xf32>, vector<20x8xf32>, vector<2x8xf32> -> vector<2x8xf32>
    %c0_9 = arith.constant 0 : index
    %c0_10 = arith.constant 0 : index
    %11 = vector.load %arg5[%c0_9, %c0_10] : memref<2x1xf32, #tpu.memory_space<vmem>>, vector<2x1xf32>
    %12 = vector.broadcast %11 : vector<2x1xf32> to vector<2x8xf32>
    %13 = arith.addf %10, %12 : vector<2x8xf32>
    %c0_11 = arith.constant 0 : index
    %c0_12 = arith.constant 0 : index
    %14 = vector.load %arg6[%c0_11, %c0_12] : memref<2x8xf32, #tpu.memory_space<vmem>>, vector<2x8xf32>
    tpu.vector_store %arg6[%c0_11, %c0_12], %13 {strides = array<i32>} : memref<2x8xf32, #tpu.memory_space<vmem>>, vector<2x8xf32>,
    return
  }
  func.func @transform_0(%arg0: i32) -> (i32, i32) {
    %c0_i32 = arith.constant 0 : i32
    %c0_i32_0 = arith.constant 0 : i32
    return %arg0, %c0_i32 : i32, i32
  }
  func.func @transform_1(%arg0: i32) -> (i32, i32) {
    %c0_i32 = arith.constant 0 : i32
    %c0_i32_0 = arith.constant 0 : i32
    %c0_i32_1 = arith.constant 0 : i32
    return %c0_i32, %c0_i32_0 : i32, i32
  }
  func.func @transform_2(%arg0: i32) -> (i32, i32) {
    %c0_i32 = arith.constant 0 : i32
    %c0_i32_0 = arith.constant 0 : i32
    %c0_i32_1 = arith.constant 0 : i32
    return %c0_i32, %c0_i32_0 : i32, i32
  }
  func.func @transform_3(%arg0: i32) -> (i32, i32) {
    %c0_i32 = arith.constant 0 : i32
    %c0_i32_0 = arith.constant 0 : i32
    %c0_i32_1 = arith.constant 0 : i32
    return %c0_i32, %c0_i32_0 : i32, i32
  }
  func.func @transform_4(%arg0: i32) -> (i32, i32) {
    %c0_i32 = arith.constant 0 : i32
    %c0_i32_0 = arith.constant 0 : i32
    %c0_i32_1 = arith.constant 0 : i32
    return %c0_i32, %c0_i32_0 : i32, i32
  }
  func.func @transform_5(%arg0: i32) -> (i32, i32) {
    %c0_i32 = arith.constant 0 : i32
    %c0_i32_0 = arith.constant 0 : i32
    return %c0_i32, %arg0 : i32, i32
  }
}

</mosaic_0001>

<bundles_post_ra>
// kernel: tpu_custom_call.1
= control target key start
LH: loop header
LB: loop body
LE: loop exit
PB: predicated region body
PF: predicated region fallthrough
CT: control target
= control target key end

     0   :  { %vm43_vm0 = vcmask 80896   ;;  %v308_v1 = vmov 0.0   ;;  %vm309_vm1 = vmmov 0   ;;  %v310_v4 = vmov 0   ;;  %s390_s0 = inlined_call_operand.vmem [shape: f32[8,10], index: 0, kind: input, shape index: {}]   ;;  %s391_s1 = inlined_call_operand.vmem [shape: f32[20,10], index: 1, kind: input, shape index: {}]   ;;  %s392_s2 = inlined_call_operand.vmem [shape: f32[20,1], index: 2, kind: input, shape index: {}]   ;;  %s393_s3 = inlined_call_operand.vmem [shape: f32[2,20], index: 3, kind: input, shape index: {}]   ;;  %s394_s4 = inlined_call_operand.vmem [shape: f32[2,1], index: 4, kind: input, shape index: {}]   ;;  %s395_s5 = inlined_call_operand.hbm [shape: f32[2,8], index: 5, kind: output, shape index: {}]  }
   0x1   :  { %v21_v0 = vld [vmem:[%s390_s0] sm:$0xff]  ;;  %254 = vmatprep.subr.mxu0 %v308_v1  ;;  %256 = vmatprep.mubr.msk.f32.mxu0 %vm309_vm1, %v308_v1  ;;  %v27_v5 = vld [vmem:[%s392_s2 + $0x10] sm:$0xf] }
   0x2   :  { %v25_v2 = vld [vmem:[%s392_s2] sm:$0xff]  ;;  %255 = vmatpush3.xpose.msk.msra.mxu0 %vm43_vm0, %v21_v0  ;;  %282 = vset.pattern.permute.xlu0 %v310_v4 }
   0x3   :  { %v22_v3 = vld [vmem:[%s391_s1] sm:$0xff] }
   0x4   :  { %10 = vsyncpa [#allocation3], 0  ;;  %30 = vperm.xlu0 %282, %v25_v2   ;;  %283 = vset.pattern.permute.xlu1 %v310_v4  ;;  %v26_v6 = vld [vmem:[%s392_s2 + $0x8] sm:$0xff]  ;;  %v140_v7 = vld [vmem:[%s394_s4] sm:$0x3]  ;;  %v311_v10 = vmov 0.0|0.0  }
   0x5   :  { %40 = vperm.xlu1 %283, %v27_v5   ;;  %271 = vmatprep.mubr.msk.f32.mxu1 %vm309_vm1, %v308_v1  ;;  %v23_v8 = vld [vmem:[%s391_s1 + $0x8] sm:$0xff]  ;;  %v24_v9 = vld [vmem:[%s391_s1 + $0x10] sm:$0xf]  ;;  %vm150_vm2 = vcmask 1043456   ;;  %v139_v27 = vld [vmem:[%s393_s3] sm:$0x3] }
   0x6   :  { %257 = vmatmul.mubr.msk.f32.vlgmr.msra.gmra.mrb[0].mxu0 %vm43_vm0, %v22_v3  ;;  %274 = vmatprep.subr.bf16.mxu1 %v311_v10  ;;  %vm146_vm3 = vcmask 162816   ;;  %s312_s7 = smov [#allocation2]   ;;  %vm224_vm4 = vcmask 58368  }
   0x7   :  { %259 = vmatprep.mubr.msk.f32.mxu0 %vm309_vm1, %v308_v1  ;;  %s232_s8 = sshll.u32 %s312_s7, 4  ;;  %s233_s8 = int_to_ptr.vmem [resolvable:$true] %s232_s8 }
   0x8   :  { %35 = vperm.xlu0 %282, %v26_v6   ;;  %s284_s9 = scalar_lea.vmem %s233_s8, 32  ;;  %p289_p1 = scmp.lt.s32.totalorder %s233_s8, %s233_s8 }
   0x9   :  { %143 = vperm.xlu1 %283, %v140_v7   ;;  %p285_p0 = scmp.ne.s32.totalorder %s233_s8, %s284_s9  ;;  %p290_p2 = scmp.lt.s32.totalorder %s284_s9, %s284_s9 }
   0xa   :  { %260 = vmatmul.mubr.msk.f32.gmra.mrb[2].mxu0 %vm43_vm0, %v23_v8 }
   0xb   :  { %262 = vmatprep.mubr.msk.f32.mxu0 %vm309_vm1, %v308_v1  ;;  %p291_p3 = por %p290_p2, %p289_p1 }
   0xd   :  { %p292_p4 = pnand %p291_p3, %p285_p0 }
   0xe   :  { %263 = vmatmul.mubr.msk.f32.gmra.mrb[4].mxu0 %vm43_vm0, %v24_v9 }
  0x83   :  { %v31_v11 = vpop.permute.xlu0 %30 }
  0x84   :  { %v41_v21 = vpop.permute.xlu1 %40 }
  0x87   :  { %v36_v15 = vpop.permute.xlu0 %35 }
  0x88   :  { %v144_v28 = vpop.permute.xlu1 %143 }
  0xd9   :  { %v122_v12 = vpop.f32.mrb[0].mxu0 }
  0xda   :  { %v258_v13 = vpop.f32.mrb[1].mxu0  ;;  %v123_v14 = vadd.f32 %v122_v12, %v31_v11 }
  0xdc   :  { %v136_v19 = vmax.f32 %v123_v14, 0.0 }
  0xdd   :  { %v127_v16 = vpop.f32.mrb[2].mxu0 }
  0xde   :  { %v128_v17 = vadd.f32 %v127_v16, %v36_v15  ;;  %v261_v18 = vpop.f32.mrb[3].mxu0 }
  0xe0   :  { %v137_v20 = vmax.f32 %v128_v17, 0.0 }
  0xe1   :  { %v132_v22 = vpop.f32.mrb[4].mxu0 }
  0xe2   :  { %v133_v23 = vadd.f32 %v132_v22, %v41_v21  ;;  %v264_v24 = vpop.f32.mrb[5].mxu0  ;;  %v275_v25 = vpack.c.bf16 %v137_v20, %v136_v19 }
  0xe4   :  { %v138_v26 = vmax.f32 %v133_v23, 0.0  ;;  %276 = vmatpush3.bf16.msra.mxu1 %v275_v25 }
  0xe5   :  { %269 = vmatprep.subr.mxu1 %v308_v1 }
  0xe8   :  { %270 = vmatpush3.msk.msra.mxu1 %vm150_vm2, %v138_v26 }
  0xe9   :  { %272 = vmatmul.mubr.msk.f32.vlgmr.msra.gmra.mrb[0].mxu1 %vm146_vm3, %v139_v27 }
 0x1bc   :  { %v220_v29 = vpop.f32.mrb[0].mxu1 }
 0x1bd   :  { %v221_v30 = vadd.f32 %v220_v29, %v144_v28  ;;  %v273_v31 = vpop.f32.mrb[1].mxu1 }
 0x1bf   :  { %225 = vst.msk [vmem:[#allocation2] sm:$0x3] %vm224_vm4, %v221_v30 }
 0x1c0   :  { %295 = shalt.err (!%p292_p4)
}
 0x1c1   :  { %s296_s11 = scalar_lea.hbm %s395_s5, 32 }
 0x1c2   :  { %p297_p5 = scmp.ne.s32.totalorder %s395_s5, %s296_s11  ;;  %p300_p6 = scmp.lt.u32.totalorder %s296_s11, %s395_s5 }
 0x1c4   :  { %p302_p7 = pnand %p300_p6, %p297_p5 }
 0x1c6   :  { %305 = shalt.err (!%p302_p7)
}
 0x1c7   :  { %235 = dma.vmem_to_hbm [thread:$0]  %s233_s8, 32, %s395_s5, [#allocation3]  }
 0x1c8   :  { %306 = dma.done.wait [#allocation3], 32  }
 0x1c9   :  { %307 = vsyncadd [#allocation3], 4294967264 }
 0x1ca   :  { %239 = vsyncpa [#allocation3], 1 }

</bundles_post_ra>
